<compile_context>
chip_gen: v5e
topology: v5e:2x2
jax: 0.10.0
libtpu: 0.0.40
codegen_flags: <defaults>
</compile_context>

<pallas_src>
import functools

import jax
import jax.numpy as jnp
from jax.experimental import pallas as pl
from jax.experimental.pallas import tpu as pltpu


def conv_block_1d_kernel(seq_len, x_ref, w1_ref, b1_ref, w2_ref, b2_ref,
                         w3_ref, b3_ref, o_ref):
    """Fused 3x(conv1d k=3 + folded-BN + ReLU) on one lane-flattened slab.

    x_ref : (Cin, N) f32, N = Bt*seq_len (Bt batches laid side by side on lanes)
    wi_ref: (3*Co_i, Ci_i) bf16, taps stacked on the output dim
            [W_prev; W_center; W_next], BN scale already folded in.
    bi_ref: (Co_i, 1) f32 folded BatchNorm shift.
    o_ref : (C3, N) f32.
    """
    x = x_ref[...]
    n = x.shape[-1]

    # Per-batch boundary masks for the conv zero padding: columns l==0 / l==L-1
    # of every flattened batch (also kills cross-batch roll contamination).
    col = jax.lax.broadcasted_iota(jnp.int32, (1, n), 1)
    pos = col % seq_len
    at_start = pos == 0
    at_end = pos == seq_len - 1

    def layer(h, w_ref, b_ref):
        co = b_ref.shape[0]
        # Single bf16 MXU matmul per layer (one push/pop sequence) computing all
        # three tap products at once; halo handled by XLU rolls of the result.
        z = jnp.dot(w_ref[...], h.astype(jnp.bfloat16),
                    preferred_element_type=jnp.float32)                 # (3*Co, N)
        y = jnp.where(at_start, 0.0, pltpu.roll(z[:co], 1, 1))          # W0 @ h[l-1]
        y = y + z[co:2 * co]                                            # W1 @ h[l]
        y = y + jnp.where(at_end, 0.0, pltpu.roll(z[2 * co:], n - 1, 1))  # W2 @ h[l+1]
        # Folded BN shift (scale already in weights) + ReLU, kept in f32.
        return jnp.maximum(y + b_ref[...], 0.0)

    h = layer(x, w1_ref, b1_ref)
    h = layer(h, w2_ref, b2_ref)
    h = layer(h, w3_ref, b3_ref)
    o_ref[...] = h.astype(o_ref.dtype)      # lane-dense store (N multiple of 128)


def fold_bn(gamma, beta, running_mean, running_var, eps=1e-5):
    """Fold eval-mode BatchNorm1d into per-channel (scale, shift) vectors."""
    scale = gamma / jnp.sqrt(running_var + eps)
    shift = beta - running_mean * scale
    return scale, shift


def _prep_layer(w, scale, shift):
    """(Co, Ci, 3) Conv1d weight + folded BN -> ((3*Co, Ci) bf16, (Co, 1) f32).

    BN scale commutes with the conv so it is folded into the weights here; the
    three taps are stacked along the output dim so each layer is one MXU matmul.
    Tap order matches PyTorch cross-correlation: tap0 -> x[l-1], tap1 -> x[l],
    tap2 -> x[l+1].
    """
    wf = w.astype(jnp.float32) * scale[:, None, None]
    w_stk = jnp.concatenate([wf[:, :, 0], wf[:, :, 1], wf[:, :, 2]], axis=0)
    return w_stk.astype(jnp.bfloat16), shift.reshape(-1, 1).astype(jnp.float32)


def _pick_batch_tile(batch, seq_len, target_lanes=2048):
    """Batches per grid step: widest lane slab <= target that still leaves >= 2
    grid steps (v7x megacore) and keeps non-final blocks 128-lane aligned."""
    cands = [bt for bt in range(1, batch + 1)
             if batch % bt == 0 and ((bt * seq_len) % 128 == 0 or bt == batch)]

    def badness(bt):
        nb = batch // bt
        return (batch >= 2 and nb < 2,         # prefer >= 2 steps for 2-TC chips
                bt * seq_len > target_lanes,   # prefer fitting the lane target
                -(bt * seq_len))               # then the widest lane slab
    return min(cands, key=badness)


def _vmem_limit_bytes(cin, c1, c2, c3, n):
    """VMEM budget from actual residency, capped below physical VMEM
    (64 MiB/TC on v7x, 128 MiB on v5e/v6e)."""
    f32, bf16 = 4, 2
    cmax = max(cin, c1, c2, c3)
    io = 2 * f32 * cin * n + 2 * f32 * c3 * n                    # 2x-buffered x / out
    weights = bf16 * 3 * (c1 * cin + c2 * c1 + c3 * c2) + f32 * (c1 + c2 + c3)
    work = f32 * n * (3 * cmax + 4 * cmax)                       # z + shifted/accum
    need = io + weights + work
    try:
        cap = int(pltpu.get_tpu_info().vmem_capacity_bytes)
    except Exception:
        cap = 64 * 2**20                                          # conservative (v7x)
    return int(min(max(2 * need, 32 * 2**20), (3 * cap) // 4))


def conv_block_1d(x, w1, s1, b1, w2, s2, b2, w3, s3, b3, *, target_lanes=2048):
    """x: (B, Cin, L) f32.  wi: (Co, Ci, 3) Conv1d weights.
    si/bi: (Co,) folded eval-mode BatchNorm1d scale/shift."""
    B, Cin, L = x.shape
    C1, C2, C3 = w1.shape[0], w2.shape[0], w3.shape[0]

    w1s, b1c = _prep_layer(w1, s1, b1)
    w2s, b2c = _prep_layer(w2, s2, b2)
    w3s, b3c = _prep_layer(w3, s3, b3)

    # Flatten batches onto the lane axis: (B, C, L) -> (C, B*L); each grid step
    # reads/writes a wide lane-dense (C, Bt*L) slab.
    bt = _pick_batch_tile(B, L, target_lanes)
    nb = B // bt
    n = bt * L
    x2d = jnp.transpose(x, (1, 0, 2)).reshape(Cin, B * L)

    mac = 3 * L * (C1 * Cin + C2 * C1 + C3 * C2)
    cost = pl.CostEstimate(
        flops=int(2 * B * mac),
        transcendentals=0,
        bytes_accessed=int(4 * B * L * (Cin + C3)
                           + 2 * 3 * (C1 * Cin + C2 * C1 + C3 * C2)
                           + 4 * (C1 + C2 + C3)),
    )

    out2d = pl.pallas_call(
        functools.partial(conv_block_1d_kernel, L),
        out_shape=jax.ShapeDtypeStruct((C3, B * L), x.dtype),
        grid_spec=pltpu.PrefetchScalarGridSpec(
            num_scalar_prefetch=0,
            grid=(nb,),
            in_specs=[
                pl.BlockSpec((Cin, n), lambda g: (0, g)),
                # Weights/shifts use constant index_maps -> DMA'd once, resident.
                pl.BlockSpec((3 * C1, Cin), lambda g: (0, 0)),
                pl.BlockSpec((C1, 1), lambda g: (0, 0)),
                pl.BlockSpec((3 * C2, C1), lambda g: (0, 0)),
                pl.BlockSpec((C2, 1), lambda g: (0, 0)),
                pl.BlockSpec((3 * C3, C2), lambda g: (0, 0)),
                pl.BlockSpec((C3, 1), lambda g: (0, 0)),
            ],
            out_specs=pl.BlockSpec((C3, n), lambda g: (0, g)),
        ),
        compiler_params=pltpu.CompilerParams(
            dimension_semantics=("parallel",),
            vmem_limit_bytes=_vmem_limit_bytes(Cin, C1, C2, C3, n),
        ),
        cost_estimate=cost,
    )(x2d, w1s, b1c, w2s, b2c, w3s, b3c)

    return jnp.transpose(out2d.reshape(C3, B, L), (1, 0, 2))


def conv_block_1d_reference(x, w1, s1, b1, w2, s2, b2, w3, s3, b3,
                            emulate_bf16=False):
    """Pure-JAX reference matching the PyTorch module (eval-mode BN folded).
    With emulate_bf16=True it mimics the kernel's bf16 MXU inputs / f32 accum."""
    def rnd(a):
        return a.astype(jnp.bfloat16).astype(jnp.float32) if emulate_bf16 else a

    def layer(h, w, s, b):
        wf = rnd(w * s[:, None, None])
        y = jax.lax.conv_general_dilated(
            rnd(h), wf, window_strides=(1,), padding=((1, 1),),
            dimension_numbers=("NCH", "OIH", "NCH"),
            precision=jax.lax.Precision.HIGHEST)
        return jnp.maximum(y + b[None, :, None], 0.0)

    h = layer(x, w1, s1, b1)
    h = layer(h, w2, s2, b2)
    return layer(h, w3, s3, b3)


if __name__ == "__main__":
    # Small shapes consistent with ConvBlock1D: (B, Cin, L) -> (B, Cout, L).
    # L multiple of 128 so every lane block is dense; B=4 exercises the
    # batch-flattening (Bt=2 -> 512-lane slabs, grid of 2 parallel steps).
    B, Cin, Cout, L = 4, 4, 8, 256

    key = jax.random.PRNGKey(0)
    keys = jax.random.split(key, 4)
    x = jax.random.normal(keys[0], (B, Cin, L), dtype=jnp.float32)

    def make_layer(k, ci, co):
        k1, k2, k3, k4, k5 = jax.random.split(k, 5)
        w = 0.3 * jax.random.normal(k1, (co, ci, 3), dtype=jnp.float32)
        gamma = 1.0 + 0.1 * jax.random.normal(k2, (co,), dtype=jnp.float32)
        beta = 0.1 * jax.random.normal(k3, (co,), dtype=jnp.float32)
        rmean = 0.1 * jax.random.normal(k4, (co,), dtype=jnp.float32)
        rvar = jnp.abs(1.0 + 0.1 * jax.random.normal(k5, (co,), dtype=jnp.float32))
        s, b = fold_bn(gamma, beta, rmean, rvar)
        return w, s, b

    w1, s1, b1 = make_layer(keys[1], Cin, Cout)
    w2, s2, b2 = make_layer(keys[2], Cout, Cout)
    w3, s3, b3 = make_layer(keys[3], Cout, Cout)

    out = conv_block_1d(x, w1, s1, b1, w2, s2, b2, w3, s3, b3)
    jax.block_until_ready(out)
    assert out.shape == (B, Cout, L)

    # Tight check vs. a reference that emulates the kernel's bf16 MXU inputs
    # (f32 accumulation): only accumulation-order noise should remain.
    ref_bf16 = conv_block_1d_reference(x, w1, s1, b1, w2, s2, b2, w3, s3, b3,
                                       emulate_bf16=True)
    assert jnp.allclose(out, ref_bf16, atol=2e-3, rtol=2e-3), \
        "mismatch vs bf16-emulated reference"

    # Loose check vs. the pure-f32 PyTorch-equivalent reference (difference is
    # only the bf16 rounding of matmul inputs).
    ref_f32 = conv_block_1d_reference(x, w1, s1, b1, w2, s2, b2, w3, s3, b3)
    assert jnp.allclose(out, ref_f32, atol=1e-1, rtol=1e-1), \
        "mismatch vs f32 reference"

    print("KERNEL_OK")
</pallas_src>

<mosaic_0001>
module attributes {stable_mosaic.version = 11 : i64} {
  func.func @conv_block_1d_kernel(%arg0: i32, %arg1: memref<4x512xf32, #tpu.memory_space<vmem>>, %arg2: memref<24x4xbf16, #tpu.memory_space<vmem>>, %arg3: memref<8x1xf32, #tpu.memory_space<vmem>>, %arg4: memref<24x8xbf16, #tpu.memory_space<vmem>>, %arg5: memref<8x1xf32, #tpu.memory_space<vmem>>, %arg6: memref<24x8xbf16, #tpu.memory_space<vmem>>, %arg7: memref<8x1xf32, #tpu.memory_space<vmem>>, %arg8: memref<8x512xf32, #tpu.memory_space<vmem>>) attributes {dimension_semantics = [#tpu.dimension_semantics<parallel>], iteration_bounds = array<i64: 2>, scalar_prefetch = 0 : i64, scratch_operands = 0 : i64, tpu.core_type = #tpu.core_type<tc>, window_params = [{transform_indices = @transform_0, window_bounds = array<i64: 4, 512>}, {pipeline_mode = #tpu.pipeline_mode<synchronous>, transform_indices = @transform_1, window_bounds = array<i64: 24, 4>}, {pipeline_mode = #tpu.pipeline_mode<synchronous>, transform_indices = @transform_2, window_bounds = array<i64: 8, 1>}, {pipeline_mode = #tpu.pipeline_mode<synchronous>, transform_indices = @transform_3, window_bounds = array<i64: 24, 8>}, {pipeline_mode = #tpu.pipeline_mode<synchronous>, transform_indices = @transform_4, window_bounds = array<i64: 8, 1>}, {pipeline_mode = #tpu.pipeline_mode<synchronous>, transform_indices = @transform_5, window_bounds = array<i64: 24, 8>}, {pipeline_mode = #tpu.pipeline_mode<synchronous>, transform_indices = @transform_6, window_bounds = array<i64: 8, 1>}, {transform_indices = @transform_7, window_bounds = array<i64: 8, 512>}]} {
    %c0 = arith.constant 0 : index
    %c0_0 = arith.constant 0 : index
    %0 = vector.load %arg1[%c0, %c0_0] : memref<4x512xf32, #tpu.memory_space<vmem>>, vector<4x512xf32>
    %1 = tpu.iota {dimensions = array<i32: 1>} : vector<1x512xi32>
    %c256_i32 = arith.constant 256 : i32
    %c0_i32 = arith.constant 0 : i32
    %2 = arith.cmpi eq, %c256_i32, %c0_i32 : i32
    %c1_i32 = arith.constant 1 : i32
    %3 = arith.select %2, %c1_i32, %c256_i32 : i32
    %4 = vector.broadcast %3 : i32 to vector<1x512xi32>
    %5 = arith.remsi %1, %4 : vector<1x512xi32>
    %c0_i32_1 = arith.constant 0 : i32
    %6 = vector.broadcast %c0_i32_1 : i32 to vector<1x512xi32>
    %7 = arith.cmpi ne, %5, %6 : vector<1x512xi32>
    %c0_i32_2 = arith.constant 0 : i32
    %8 = vector.broadcast %c0_i32_2 : i32 to vector<1x512xi32>
    %9 = arith.cmpi slt, %5, %8 : vector<1x512xi32>
    %c0_i32_3 = arith.constant 0 : i32
    %10 = arith.cmpi slt, %3, %c0_i32_3 : i32
    %11 = vector.broadcast %10 : i1 to vector<1x512xi1>
    %12 = vector.broadcast %11 : vector<1x512xi1> to vector<1x512xi1>
    %13 = arith.xori %9, %12 : vector<1x512xi1>
    %14 = arith.andi %13, %7 : vector<1x512xi1>
    %15 = vector.broadcast %3 : i32 to vector<1x512xi32>
    %16 = arith.addi %5, %15 : vector<1x512xi32>
    %17 = arith.select %14, %16, %5 : vector<1x512xi1>, vector<1x512xi32>
    %c0_i32_4 = arith.constant 0 : i32
    %18 = vector.broadcast %c0_i32_4 : i32 to vector<1x512xi32>
    %19 = arith.cmpi eq, %17, %18 : vector<1x512xi32>
    %c255_i32 = arith.constant 255 : i32
    %20 = vector.broadcast %c255_i32 : i32 to vector<1x512xi32>
    %21 = arith.cmpi eq, %17, %20 : vector<1x512xi32>
    %c0_5 = arith.constant 0 : index
    %c0_6 = arith.constant 0 : index
    %22 = vector.load %arg2[%c0_5, %c0_6] : memref<24x4xbf16, #tpu.memory_space<vmem>>, vector<24x4xbf16>
    %23 = arith.truncf %0 : vector<4x512xf32> to vector<4x512xbf16>
    %cst = arith.constant dense<0.000000e+00> : vector<24x512xf32>
    %24 = tpu.matmul %22, %23, %cst {dimension_numbers = #tpu.dot_dimension_numbers<[1], [0], [0], [1], [0, 0, 1, 1], [], []>} : vector<24x4xbf16>, vector<4x512xbf16>, vector<24x512xf32> -> vector<24x512xf32>
    %25 = vector.extract_strided_slice %24 {offsets = [0, 0], sizes = [8, 512], strides = [1, 1]} : vector<24x512xf32> to vector<8x512xf32>
    %c1_i32_7 = arith.constant 1 : i32
    %26 = tpu.dynamic_rotate %25 by %c1_i32_7 dim 1 : vector<8x512xf32>, i32 -> vector<8x512xf32>
    %cst_8 = arith.constant 0.000000e+00 : f32
    %27 = vector.shape_cast %19 : vector<1x512xi1> to vector<1x512xi1>
    %28 = vector.broadcast %27 : vector<1x512xi1> to vector<8x512xi1>
    %29 = vector.broadcast %cst_8 : f32 to vector<8x512xf32>
    %30 = arith.select %28, %29, %26 : vector<8x512xi1>, vector<8x512xf32>
    %31 = vector.extract_strided_slice %24 {offsets = [8, 0], sizes = [8, 512], strides = [1, 1]} : vector<24x512xf32> to vector<8x512xf32>
    %32 = arith.addf %30, %31 : vector<8x512xf32>
    %33 = vector.extract_strided_slice %24 {offsets = [16, 0], sizes = [8, 512], strides = [1, 1]} : vector<24x512xf32> to vector<8x512xf32>
    %c511_i32 = arith.constant 511 : i32
    %34 = tpu.dynamic_rotate %33 by %c511_i32 dim 1 : vector<8x512xf32>, i32 -> vector<8x512xf32>
    %cst_9 = arith.constant 0.000000e+00 : f32
    %35 = vector.shape_cast %21 : vector<1x512xi1> to vector<1x512xi1>
    %36 = vector.broadcast %35 : vector<1x512xi1> to vector<8x512xi1>
    %37 = vector.broadcast %cst_9 : f32 to vector<8x512xf32>
    %38 = arith.select %36, %37, %34 : vector<8x512xi1>, vector<8x512xf32>
    %39 = arith.addf %32, %38 : vector<8x512xf32>
    %c0_10 = arith.constant 0 : index
    %c0_11 = arith.constant 0 : index
    %40 = vector.load %arg3[%c0_10, %c0_11] : memref<8x1xf32, #tpu.memory_space<vmem>>, vector<8x1xf32>
    %41 = vector.broadcast %40 : vector<8x1xf32> to vector<8x512xf32>
    %42 = arith.addf %39, %41 : vector<8x512xf32>
    %cst_12 = arith.constant 0.000000e+00 : f32
    %43 = vector.broadcast %cst_12 : f32 to vector<8x512xf32>
    %44 = arith.maximumf %42, %43 : vector<8x512xf32>
    %c0_13 = arith.constant 0 : index
    %c0_14 = arith.constant 0 : index
    %45 = vector.load %arg4[%c0_13, %c0_14] : memref<24x8xbf16, #tpu.memory_space<vmem>>, vector<24x8xbf16>
    %46 = arith.truncf %44 : vector<8x512xf32> to vector<8x512xbf16>
    %cst_15 = arith.constant dense<0.000000e+00> : vector<24x512xf32>
    %47 = tpu.matmul %45, %46, %cst_15 {dimension_numbers = #tpu.dot_dimension_numbers<[1], [0], [0], [1], [0, 0, 1, 1], [], []>} : vector<24x8xbf16>, vector<8x512xbf16>, vector<24x512xf32> -> vector<24x512xf32>
    %48 = vector.extract_strided_slice %47 {offsets = [0, 0], sizes = [8, 512], strides = [1, 1]} : vector<24x512xf32> to vector<8x512xf32>
    %c1_i32_16 = arith.constant 1 : i32
    %49 = tpu.dynamic_rotate %48 by %c1_i32_16 dim 1 : vector<8x512xf32>, i32 -> vector<8x512xf32>
    %cst_17 = arith.constant 0.000000e+00 : f32
    %50 = vector.shape_cast %19 : vector<1x512xi1> to vector<1x512xi1>
    %51 = vector.broadcast %50 : vector<1x512xi1> to vector<8x512xi1>
    %52 = vector.broadcast %cst_17 : f32 to vector<8x512xf32>
    %53 = arith.select %51, %52, %49 : vector<8x512xi1>, vector<8x512xf32>
    %54 = vector.extract_strided_slice %47 {offsets = [8, 0], sizes = [8, 512], strides = [1, 1]} : vector<24x512xf32> to vector<8x512xf32>
    %55 = arith.addf %53, %54 : vector<8x512xf32>
    %56 = vector.extract_strided_slice %47 {offsets = [16, 0], sizes = [8, 512], strides = [1, 1]} : vector<24x512xf32> to vector<8x512xf32>
    %c511_i32_18 = arith.constant 511 : i32
    %57 = tpu.dynamic_rotate %56 by %c511_i32_18 dim 1 : vector<8x512xf32>, i32 -> vector<8x512xf32>
    %cst_19 = arith.constant 0.000000e+00 : f32
    %58 = vector.shape_cast %21 : vector<1x512xi1> to vector<1x512xi1>
    %59 = vector.broadcast %58 : vector<1x512xi1> to vector<8x512xi1>
    %60 = vector.broadcast %cst_19 : f32 to vector<8x512xf32>
    %61 = arith.select %59, %60, %57 : vector<8x512xi1>, vector<8x512xf32>
    %62 = arith.addf %55, %61 : vector<8x512xf32>
    %c0_20 = arith.constant 0 : index
    %c0_21 = arith.constant 0 : index
    %63 = vector.load %arg5[%c0_20, %c0_21] : memref<8x1xf32, #tpu.memory_space<vmem>>, vector<8x1xf32>
    %64 = vector.broadcast %63 : vector<8x1xf32> to vector<8x512xf32>
    %65 = arith.addf %62, %64 : vector<8x512xf32>
    %cst_22 = arith.constant 0.000000e+00 : f32
    %66 = vector.broadcast %cst_22 : f32 to vector<8x512xf32>
    %67 = arith.maximumf %65, %66 : vector<8x512xf32>
    %c0_23 = arith.constant 0 : index
    %c0_24 = arith.constant 0 : index
    %68 = vector.load %arg6[%c0_23, %c0_24] : memref<24x8xbf16, #tpu.memory_space<vmem>>, vector<24x8xbf16>
    %69 = arith.truncf %67 : vector<8x512xf32> to vector<8x512xbf16>
    %cst_25 = arith.constant dense<0.000000e+00> : vector<24x512xf32>
    %70 = tpu.matmul %68, %69, %cst_25 {dimension_numbers = #tpu.dot_dimension_numbers<[1], [0], [0], [1], [0, 0, 1, 1], [], []>} : vector<24x8xbf16>, vector<8x512xbf16>, vector<24x512xf32> -> vector<24x512xf32>
    %71 = vector.extract_strided_slice %70 {offsets = [0, 0], sizes = [8, 512], strides = [1, 1]} : vector<24x512xf32> to vector<8x512xf32>
    %c1_i32_26 = arith.constant 1 : i32
    %72 = tpu.dynamic_rotate %71 by %c1_i32_26 dim 1 : vector<8x512xf32>, i32 -> vector<8x512xf32>
    %cst_27 = arith.constant 0.000000e+00 : f32
    %73 = vector.shape_cast %19 : vector<1x512xi1> to vector<1x512xi1>
    %74 = vector.broadcast %73 : vector<1x512xi1> to vector<8x512xi1>
    %75 = vector.broadcast %cst_27 : f32 to vector<8x512xf32>
    %76 = arith.select %74, %75, %72 : vector<8x512xi1>, vector<8x512xf32>
    %77 = vector.extract_strided_slice %70 {offsets = [8, 0], sizes = [8, 512], strides = [1, 1]} : vector<24x512xf32> to vector<8x512xf32>
    %78 = arith.addf %76, %77 : vector<8x512xf32>
    %79 = vector.extract_strided_slice %70 {offsets = [16, 0], sizes = [8, 512], strides = [1, 1]} : vector<24x512xf32> to vector<8x512xf32>
    %c511_i32_28 = arith.constant 511 : i32
    %80 = tpu.dynamic_rotate %79 by %c511_i32_28 dim 1 : vector<8x512xf32>, i32 -> vector<8x512xf32>
    %cst_29 = arith.constant 0.000000e+00 : f32
    %81 = vector.shape_cast %21 : vector<1x512xi1> to vector<1x512xi1>
    %82 = vector.broadcast %81 : vector<1x512xi1> to vector<8x512xi1>
    %83 = vector.broadcast %cst_29 : f32 to vector<8x512xf32>
    %84 = arith.select %82, %83, %80 : vector<8x512xi1>, vector<8x512xf32>
    %85 = arith.addf %78, %84 : vector<8x512xf32>
    %c0_30 = arith.constant 0 : index
    %c0_31 = arith.constant 0 : index
    %86 = vector.load %arg7[%c0_30, %c0_31] : memref<8x1xf32, #tpu.memory_space<vmem>>, vector<8x1xf32>
    %87 = vector.broadcast %86 : vector<8x1xf32> to vector<8x512xf32>
    %88 = arith.addf %85, %87 : vector<8x512xf32>
    %cst_32 = arith.constant 0.000000e+00 : f32
    %89 = vector.broadcast %cst_32 : f32 to vector<8x512xf32>
    %90 = arith.maximumf %88, %89 : vector<8x512xf32>
    %c0_33 = arith.constant 0 : index
    %c0_34 = arith.constant 0 : index
    %91 = vector.load %arg8[%c0_33, %c0_34] : memref<8x512xf32, #tpu.memory_space<vmem>>, vector<8x512xf32>
    tpu.vector_store %arg8[%c0_33, %c0_34], %90 {strides = array<i32>} : memref<8x512xf32, #tpu.memory_space<vmem>>, vector<8x512xf32>,
    return
  }
  func.func @transform_0(%arg0: i32) -> (i32, i32) {
    %c0_i32 = arith.constant 0 : i32
    %c0_i32_0 = arith.constant 0 : i32
    return %c0_i32, %arg0 : i32, i32
  }
  func.func @transform_1(%arg0: i32) -> (i32, i32) {
    %c0_i32 = arith.constant 0 : i32
    %c0_i32_0 = arith.constant 0 : i32
    %c0_i32_1 = arith.constant 0 : i32
    return %c0_i32, %c0_i32_0 : i32, i32
  }
  func.func @transform_2(%arg0: i32) -> (i32, i32) {
    %c0_i32 = arith.constant 0 : i32
    %c0_i32_0 = arith.constant 0 : i32
    %c0_i32_1 = arith.constant 0 : i32
    return %c0_i32, %c0_i32_0 : i32, i32
  }
  func.func @transform_3(%arg0: i32) -> (i32, i32) {
    %c0_i32 = arith.constant 0 : i32
    %c0_i32_0 = arith.constant 0 : i32
    %c0_i32_1 = arith.constant 0 : i32
    return %c0_i32, %c0_i32_0 : i32, i32
  }
  func.func @transform_4(%arg0: i32) -> (i32, i32) {
    %c0_i32 = arith.constant 0 : i32
    %c0_i32_0 = arith.constant 0 : i32
    %c0_i32_1 = arith.constant 0 : i32
    return %c0_i32, %c0_i32_0 : i32, i32
  }
  func.func @transform_5(%arg0: i32) -> (i32, i32) {
    %c0_i32 = arith.constant 0 : i32
    %c0_i32_0 = arith.constant 0 : i32
    %c0_i32_1 = arith.constant 0 : i32
    return %c0_i32, %c0_i32_0 : i32, i32
  }
  func.func @transform_6(%arg0: i32) -> (i32, i32) {
    %c0_i32 = arith.constant 0 : i32
    %c0_i32_0 = arith.constant 0 : i32
    %c0_i32_1 = arith.constant 0 : i32
    return %c0_i32, %c0_i32_0 : i32, i32
  }
  func.func @transform_7(%arg0: i32) -> (i32, i32) {
    %c0_i32 = arith.constant 0 : i32
    %c0_i32_0 = arith.constant 0 : i32
    return %c0_i32, %arg0 : i32, i32
  }
}

</mosaic_0001>

<bundles_post_ra>
// kernel: tpu_custom_call.1
= control target key start
LH: loop header
LB: loop body
LE: loop exit
PB: predicated region body
PF: predicated region fallthrough
CT: control target
= control target key end

     0   :  { %12 = vsyncpa [#allocation3], 0  ;;  %s1399_s0 = inlined_call_operand.vmem [shape: f32[4,1024], index: 0, kind: input, shape index: {}]   ;;  %s1400_s1 = inlined_call_operand.vmem [shape: bf16[24,4], index: 1, kind: input, shape index: {}]   ;;  %s1401_s2 = inlined_call_operand.vmem [shape: f32[8,1], index: 2, kind: input, shape index: {}]   ;;  %s1402_s3 = inlined_call_operand.vmem [shape: bf16[24,8], index: 3, kind: input, shape index: {}]   ;;  %s1403_s4 = inlined_call_operand.vmem [shape: f32[8,1], index: 4, kind: input, shape index: {}]   ;;  %s1404_s5 = inlined_call_operand.vmem [shape: bf16[24,8], index: 5, kind: input, shape index: {}]   ;;  %s1405_s6 = inlined_call_operand.vmem [shape: f32[8,1], index: 6, kind: input, shape index: {}]   ;;  %s1406_s7 = inlined_call_operand.hbm [shape: f32[8,1024], index: 7, kind: output, shape index: {}]  }
   0x1   :  { %14 = vsyncpa [#allocation3 + $0x1], 0  ;;  %s1140_s24 = smov 0   ;;  %s1142_s25 = smov 0  }
   0x2   :  { %s1144_s26 = smov 0   ;;  %s1146_s27 = smov 0  }
   0x3 LB: > { %s1161_s28 = sadd.s32 4294967295, %s1095_s27   ;;  %s936_s29 = sadd.s32 4294967294, %s1095_s27   ;;  %s1095_s27 = sphi %s1146_s27, %s1420_s27   ;;  %s1091_s26 = sphi %s1144_s26, %s1419_s26   ;;  %s1087_s25 = sphi %s1142_s25, %s1418_s25   ;;  %s1083_s24 = sphi %s1140_s24, %s1417_s24  }
   0x4   : > { %s1165_s30 = sadd.s32 1, %s1095_s27   ;;  %s179_s8 = sadd.s32 1, %s1091_s26 }
   0x5   : > { %s176_s9 = ssub.s32 %s1095_s27, %s1165_s30  ;;  %p189_p0 = scmp.ne.s32.totalorder %s1091_s26, %s1087_s25 }
   0x6   : > { %p177_p1 = scmp.eq.s32.totalorder %s176_s9, 0  ;;  %p190_p2 = scmp.eq.s32.totalorder %s1161_s28, 1 }
   0x7   : > { %p195_p3 = scmp.ne.s32.totalorder %s1087_s25, %s1083_s24  ;;  %p196_p4 = scmp.eq.s32.totalorder %s936_s29, 1 }
   0x8   : > { %s1176_s10 = scalar_select %p177_p1, %s1091_s26, %s179_s8  }
   0x9   : > { %p1178_p5 = por %p190_p2, %p189_p0  ;;  %p1182_p6 = por %p196_p4, %p195_p3 }
   0xa   : > { %p939_p7 = scmp.ge.s32.totalorder %s1095_s27, 1  ;;  %p241_p8 = scmp.lt.s32.totalorder %s1095_s27, 3 }
   0xc   : > { %p242_p9 = pnand %p939_p7, %p241_p8 }
   0xd   : > { %s941_s13 = sshll.u32 (!%p242_p9), %s1161_s28, 2  ;;  %s1098_s22 = smov (!%p242_p9), 1  }
   0xe   : > { %245 = sbr.rel (%p242_p9) target bundleno = 871 (0x367), region = 48  ;;  %p274_p10 = scmp.lt.s32.totalorder (!%p242_p9), %s941_s13, 7 }
   0xf   : > { %s1099_s23 = smov (!%p242_p9), 127   ;;  %s987_s9 = sshll.u32 (!%p242_p9), %s1161_s28, 5 }
  0x10   : > { %s872_s15 = scalar_lea.hbm (!%p242_p9), %s1406_s7, %s987_s9  ;;  %s1053_s8 = scalar_lea.hbm (!%p242_p9), %s1406_s7, 64 }
  0x13   : > { %s1422_s13 = smov (!%p274_p10, %s941_s13), 7  ;;  %vm379_vm0 = vcmask 1041408   ;;  %v984_v12 = vld [vmem:[%s1400_s1] sm:$0xff]  ;;  %vm372_vm1 = vcmask 31744   ;;  %v346_v15 = vld [vmem:[%s1400_s1 + $0x8] sm:$0xf]  ;;  %v283_v36 = vlaneseq }
  0x14   : > { %s942_s14 = sshll.u32 %s1422_s13, 2  ;;  %v369_v16 = vunpack.c.l.b16 %v346_v15  ;;  %v1097_v18 = vmov 0   ;;  %v522_v29 = vld [vmem:[%s1401_s2] sm:$0xff]  ;;  %vm558_vm8 = vcmask 1043456   ;;  %vm551_vm9 = vcmask 64512  }
  0x15   : > { %s277_s17 = scalar_lea.vmem %s1399_s0, %s942_s14  ;;  %1030 = vset.pattern.permute.xlu1 %v1097_v18  ;;  %1031 = vset.pattern.permute.xlu2 %v1097_v18  ;;  %v1209_v39 = vand.u32 127, %v283_v36 }
  0x16   : > { %v281_v0 = vld [vmem:[%s277_s17] sm:$0xff]  ;;  %v282_v1 = vld [vmem:[%s277_s17 + $0x8] sm:$0xff]  ;;  %v371_v17 = vpack.c.b16 %v369_v16, %v369_v16  ;;  %1032 = vset.pattern.permute.xlu0 %v1097_v18  ;;  %s876_s17 = sshll.u32 %s872_s15, 4  ;;  %s877_s17 = int_to_ptr.hbm [resolvable:$true] %s876_s17 }
  0x17   : > { %349 = vst [vmem:[#allocation1] ss:$2 sm:$0xff] %v281_v0  ;;  %v286_v40 = vadd.s32 256, %v1209_v39  ;;  %v287_v45 = vadd.s32 384, %v1209_v39  ;;  %vm472_vm2 = vcmp.lt.s32.totalorder %v1209_v39, 1  ;;  %v285_v46 = vadd.s32 128, %v1209_v39 }
  0x18   : > { %351 = vst [vmem:[#allocation1 + $0x10] ss:$2 sm:$0xff] %v282_v1  ;;  %v292_v47 = vand.u32 255, %v1209_v39  ;;  %vm501_vm5 = vcmp.lt.s32.totalorder %v1209_v39, 127  ;;  %s1047_s19 = sshra.s32 %s877_s17, 4  ;;  %s1048_s19 = int_to_ptr.hbm [resolvable:$true] %s1047_s19 }
  0x19   : > { %v306_v44 = vand.u32 255, %v286_v40  ;;  %v313_v50 = vand.u32 255, %v287_v45  ;;  %v299_v51 = vand.u32 255, %v285_v46  ;;  %s1049_s20 = scalar_lea.hbm %s1048_s19, 32  ;;  %p1054_p0 = scmp.lt.s32.totalorder %s1048_s19, %s1406_s7 }
  0x1a   : > { %vm1222_vm4 = vcmp.eq.s32.totalorder %v292_v47, 0  ;;  %p1050_p11 = scmp.ne.s32.totalorder %s1048_s19, %s1049_s20  ;;  %p1055_p1 = scmp.lt.s32.totalorder %s1053_s8, %s1049_s20 }
  0x1b   : > { %vm1216_vm3 = vcmp.eq.s32.totalorder %v306_v44, 0  ;;  %vm1233_vm6 = vcmp.eq.s32.totalorder %v313_v50, 255  ;;  %vm1239_vm7 = vcmp.eq.s32.totalorder %v299_v51, 255  ;;  %v683_v50 = vld [vmem:[%s1403_s4] sm:$0xff] }
  0x1c   : > { %p1051_p12 = pnand %p1050_p11, %p1178_p5  ;;  %p1056_p2 = por %p1055_p1, %p1054_p0 }
  0x1e   : > { %v352_v2 = vld.sshfl [vmem:[#allocation1] sm:$0xff pattern:$0x75316420]  ;;  %v353_v3 = vld.sshfl [vmem:[#allocation1 + $0x8] sm:$0xff pattern:$0x75316420]  ;;  %p1052_p13 = pneg %p1051_p12 }
  0x1f   : > { %v360_v4 = vpack.c.bf16 %v352_v2, %v352_v2  ;;  %v361_v5 = vpack.c.bf16 %v353_v3, %v353_v3  ;;  %v354_v6 = vld.sshfl [vmem:[#allocation1 + $0x10] sm:$0xff pattern:$0x75316420]  ;;  %v355_v7 = vld.sshfl [vmem:[#allocation1 + $0x18] sm:$0xff pattern:$0x75316420] }
  0x20   : > { %v362_v8 = vpack.c.bf16 %v354_v6, %v354_v6  ;;  %v363_v9 = vpack.c.bf16 %v355_v7, %v355_v7  ;;  %p1057_p3 = pnand %p1056_p2, %p1052_p13 }
  0x21   : > { %v381_v10 = vsel %vm379_vm0, %v360_v4, 0  ;;  %v384_v11 = vsel %vm379_vm0, %v361_v5, 0 }
  0x22   : > { %399 = vmatpush.bf16.msra.mxu0 %v381_v10  ;;  %417 = vmatpush.bf16.msra.mxu1 %v384_v11  ;;  %v387_v13 = vsel %vm379_vm0, %v362_v8, 0  ;;  %v390_v14 = vsel %vm379_vm0, %v363_v9, 0 }
  0x23   : > { %435 = vmatpush.bf16.msra.mxu2 %v387_v13  ;;  %453 = vmatpush.bf16.msra.mxu3 %v390_v14 }
  0x25   : > { %947 = vmatmul.msk.bf16.vlgmr.msra.gmra.mxu0 %vm372_vm1, %v984_v12  ;;  %949 = vmatmul.msk.bf16.vlgmr.msra.gmra.mxu1 %vm372_vm1, %v984_v12 }
  0x26   : > { %951 = vmatmul.msk.bf16.vlgmr.msra.gmra.mxu2 %vm372_vm1, %v984_v12  ;;  %953 = vmatmul.msk.bf16.vlgmr.msra.gmra.mxu3 %vm372_vm1, %v984_v12 }
  0x35   : > { %948 = vmatmul.msk.bf16.gmra.mxu0 %vm372_vm1, %v371_v17  ;;  %950 = vmatmul.msk.bf16.gmra.mxu1 %vm372_vm1, %v371_v17 }
  0x36   : > { %954 = vmatmul.msk.bf16.gmra.mxu3 %vm372_vm1, %v371_v17  ;;  %952 = vmatmul.msk.bf16.gmra.mxu2 %vm372_vm1, %v371_v17 }
  0xa2   : > { %v401_v19 = vpop.f32.mrf.mxu0  ;;  %v419_v20 = vpop.f32.mrf.mxu1 }
  0xa3   : > { %466 = vrot.lane.b32.xlu0 %v419_v20, %s1098_s22 }
  0xa9   : > { %v437_v21 = vpop.f32.mrf.mxu2  ;;  %v455_v22 = vpop.f32.mrf.mxu3 }
  0xaa   : > { %v403_v23 = vpop.f32.mrf.mxu0  ;;  %v421_v24 = vpop.f32.mrf.mxu1  ;;  %470 = vrot.lane.b32.xlu1 %v455_v22, %s1098_s22 }
  0xab   : > { %468 = vrot.lane.b32.xlu0 %v437_v21, %s1098_s22 }
  0xb1   : > { %v439_v25 = vpop.f32.mrf.mxu2  ;;  %v457_v26 = vpop.f32.mrf.mxu3 }
  0xb2   : > { %v406_v27 = vpop.f32.mrf.mxu0  ;;  %v424_v28 = vpop.f32.mrf.mxu1 }
  0xb3   : > { %464 = vrot.lane.b32.xlu0 %v401_v19, %s1098_s22  ;;  %493 = vrot.lane.b32.xlu1 %v406_v27, %s1099_s23 }
  0xb9   : > { %v460_v30 = vpop.f32.mrf.mxu3  ;;  %v442_v31 = vpop.f32.mrf.mxu2 }
  0xba   : > { %499 = vrot.lane.b32.xlu2 %v460_v30, %s1099_s23  ;;  %v408_v32 = vpop.f32.mrf.mxu0  ;;  %v426_v33 = vpop.f32.mrf.mxu1  ;;  %v985_v30 = vld [vmem:[%s1402_s3] sm:$0xff] }
  0xbb   : > { %525 = vperm.xlu1 %1030, %v522_v29  }
  0xc1   : > { %v462_v34 = vpop.f32.mrf.mxu3  ;;  %v444_v35 = vpop.f32.mrf.mxu2 }
  0xc2   : > { %497 = vrot.lane.b32.xlu2 %v442_v31, %s1099_s23  ;;  %v538_v31 = vld [vmem:[%s1402_s3 + $0x8] sm:$0xf] }
  0xc3   : > { %v548_v32 = vunpack.c.l.b16 %v538_v31 }
  0xc5   : > { %v550_v33 = vpack.c.b16 %v548_v32, %v548_v32 }
  0xca   : > { %495 = vrot.lane.b32.xlu2 %v424_v28, %s1099_s23 }
 0x114   : > { %v500_v37 = vpop.permute.xlu2 %499 }
 0x115   : > { %v467_v38 = vpop.permute.xlu0 %466 }
 0x11c   : > { %v498_v41 = vpop.permute.xlu2 %497  ;;  %v471_v42 = vpop.permute.xlu1 %470 }
 0x11d   : > { %v469_v43 = vpop.permute.xlu0 %468  ;;  %v502_v6 = vsel %vm501_vm5, %v498_v41, %v500_v37 }
 0x11e   : > { %v474_v49 = vsel %vm472_vm2, %v467_v38, %v469_v43  ;;  %v473_v60 = vsel %vm472_vm2, %v469_v43, %v471_v42 }
 0x11f   : > { %v487_v54 = vsel %vm1216_vm3, 0.0, %v474_v49  ;;  %v492_v5 = vadd.f32 %v473_v60, %v457_v26 }
 0x120   : > { %v491_v0 = vadd.f32 %v487_v54, %v439_v25 }
 0x122   : > { %v520_v12 = vadd.f32 %v502_v6, %v491_v0 }
 0x124   : > { %v496_v52 = vpop.permute.xlu2 %495 }
 0x125   : > { %v465_v55 = vpop.permute.xlu0 %464  ;;  %v494_v56 = vpop.permute.xlu1 %493  ;;  %v503_v1 = vsel %vm501_vm5, %v496_v52, %v498_v41 }
 0x126   : > { %v475_v57 = vsel %vm472_vm2, %v465_v55, %v467_v38  ;;  %v476_v58 = vsel %vm472_vm2, %v471_v42, %v465_v55  ;;  %v505_v63 = vsel %vm501_vm5, %v500_v37, %v494_v56  ;;  %v515_v7 = vsel %vm1239_vm7, 0.0, %v503_v1 }
 0x127   : > { %v485_v62 = vsel %vm1222_vm4, 0.0, %v476_v58  ;;  %v490_v3 = vadd.f32 %v475_v57, %v421_v24  ;;  %v517_v4 = vsel %vm1233_vm6, 0.0, %v505_v63  ;;  %v504_v8 = vsel %vm501_vm5, %v494_v56, %v496_v52 }
 0x128   : > { %v489_v2 = vadd.f32 %v485_v62, %v403_v23  ;;  %v521_v11 = vadd.f32 %v517_v4, %v492_v5 }
 0x129   : > { %v519_v9 = vadd.f32 %v515_v7, %v490_v3 }
 0x12a   : > { %v518_v10 = vadd.f32 %v504_v8, %v489_v2 }
 0x12d   : > { %v526_v13 = vpop.permute.xlu1 %525 }
 0x12e   : > { %v528_v14 = vadd.f32 %v526_v13, %v518_v10  ;;  %v529_v15 = vadd.f32 %v526_v13, %v519_v9  ;;  %v530_v16 = vadd.f32 %v526_v13, %v520_v12  ;;  %v531_v17 = vadd.f32 %v526_v13, %v521_v11 }
 0x130   : > { %v532_v18 = vmax.f32 %v528_v14, 0.0  ;;  %v533_v19 = vmax.f32 %v529_v15, 0.0  ;;  %v534_v20 = vmax.f32 %v530_v16, 0.0  ;;  %v535_v21 = vmax.f32 %v531_v17, 0.0 }
 0x132   : > { %v539_v22 = vpack.c.bf16 %v532_v18, %v532_v18  ;;  %v540_v23 = vpack.c.bf16 %v533_v19, %v533_v19  ;;  %v541_v24 = vpack.c.bf16 %v534_v20, %v534_v20  ;;  %v542_v25 = vpack.c.bf16 %v535_v21, %v535_v21 }
 0x134   : > { %v560_v26 = vsel %vm558_vm8, %v539_v22, 0  ;;  %v563_v27 = vsel %vm558_vm8, %v540_v23, 0  ;;  %v566_v28 = vsel %vm558_vm8, %v541_v24, 0  ;;  %v569_v29 = vsel %vm558_vm8, %v542_v25, 0 }
 0x135   : > { %578 = vmatpush.bf16.msrb.mxu0 %v560_v26  ;;  %596 = vmatpush.bf16.msrb.mxu1 %v563_v27 }
 0x136   : > { %614 = vmatpush.bf16.msrb.mxu2 %v566_v28  ;;  %632 = vmatpush.bf16.msrb.mxu3 %v569_v29 }
 0x138   : > { %959 = vmatmul.msk.bf16.vlgmr.msrb.gmra.mxu0 %vm551_vm9, %v985_v30  ;;  %961 = vmatmul.msk.bf16.vlgmr.msrb.gmra.mxu1 %vm551_vm9, %v985_v30 }
 0x139   : > { %963 = vmatmul.msk.bf16.vlgmr.msrb.gmra.mxu2 %vm551_vm9, %v985_v30  ;;  %965 = vmatmul.msk.bf16.vlgmr.msrb.gmra.mxu3 %vm551_vm9, %v985_v30 }
 0x148   : > { %960 = vmatmul.msk.bf16.gmra.mxu0 %vm551_vm9, %v550_v33  ;;  %962 = vmatmul.msk.bf16.gmra.mxu1 %vm551_vm9, %v550_v33 }
 0x149   : > { %966 = vmatmul.msk.bf16.gmra.mxu3 %vm551_vm9, %v550_v33  ;;  %964 = vmatmul.msk.bf16.gmra.mxu2 %vm551_vm9, %v550_v33 }
 0x1b5   : > { %v580_v34 = vpop.f32.mrf.mxu0  ;;  %v598_v35 = vpop.f32.mrf.mxu1 }
 0x1b6   : > { %645 = vrot.lane.b32.xlu0 %v598_v35, %s1098_s22 }
 0x1bc   : > { %v616_v36 = vpop.f32.mrf.mxu2  ;;  %v634_v37 = vpop.f32.mrf.mxu3 }
 0x1bd   : > { %649 = vrot.lane.b32.xlu2 %v634_v37, %s1098_s22  ;;  %647 = vrot.lane.b32.xlu1 %v616_v36, %s1098_s22  ;;  %v582_v38 = vpop.f32.mrf.mxu0  ;;  %v600_v40 = vpop.f32.mrf.mxu1  ;;  %v986_v37 = vld [vmem:[%s1404_s5] sm:$0xff] }
 0x1c4   : > { %v618_v41 = vpop.f32.mrf.mxu2  ;;  %v636_v42 = vpop.f32.mrf.mxu3 }
 0x1c5   : > { %v585_v43 = vpop.f32.mrf.mxu0  ;;  %v603_v44 = vpop.f32.mrf.mxu1 }
 0x1c6   : > { %663 = vrot.lane.b32.xlu0 %v585_v43, %s1099_s23 }
 0x1cc   : > { %v639_v45 = vpop.f32.mrf.mxu3  ;;  %v621_v46 = vpop.f32.mrf.mxu2 }
 0x1cd   : > { %669 = vrot.lane.b32.xlu1 %v639_v45, %s1099_s23  ;;  %v587_v47 = vpop.f32.mrf.mxu0  ;;  %667 = vrot.lane.b32.xlu2 %v621_v46, %s1099_s23  ;;  %v605_v49 = vpop.f32.mrf.mxu1 }
 0x1ce   : > { %643 = vrot.lane.b32.xlu0 %v580_v34, %s1098_s22 }
 0x1d4   : > { %v641_v51 = vpop.f32.mrf.mxu3  ;;  %v623_v52 = vpop.f32.mrf.mxu2 }
 0x1d5   : > { %686 = vperm.xlu1 %1030, %v683_v50   ;;  %665 = vrot.lane.b32.xlu2 %v603_v44, %s1099_s23 }
 0x217   : > { %v650_v54 = vpop.permute.xlu2 %649 }
 0x227   : > { %v668_v56 = vpop.permute.xlu2 %667 }
 0x228   : > { %v646_v55 = vpop.permute.xlu0 %645 }
 0x22f   : > { %v648_v57 = vpop.permute.xlu1 %647  ;;  %v666_v62 = vpop.permute.xlu2 %665 }
 0x230   : > { %v652_v60 = vsel %vm472_vm2, %v646_v55, %v648_v57  ;;  %v672_v0 = vsel %vm501_vm5, %v666_v62, %v668_v56  ;;  %v651_v3 = vsel %vm472_vm2, %v648_v57, %v650_v54 }
 0x231   : > { %v657_v4 = vsel %vm1216_vm3, 0.0, %v652_v60  ;;  %v676_v9 = vsel %vm1239_vm7, 0.0, %v672_v0  ;;  %v662_v13 = vadd.f32 %v651_v3, %v636_v42 }
 0x232   : > { %v661_v14 = vadd.f32 %v657_v4, %v618_v41 }
 0x238   : > { %v664_v58 = vpop.permute.xlu0 %663 }
 0x239   : > { %v673_v15 = vsel %vm501_vm5, %v664_v58, %v666_v62 }
 0x23f   : > { %v670_v63 = vpop.permute.xlu1 %669 }
 0x240   : > { %v674_v1 = vsel %vm501_vm5, %v670_v63, %v664_v58  ;;  %v644_v2 = vpop.permute.xlu0 %643  ;;  %v671_v10 = vsel %vm501_vm5, %v668_v56, %v670_v63 }
 0x241   : > { %v653_v5 = vsel %vm472_vm2, %v644_v2, %v646_v55  ;;  %v654_v6 = vsel %vm472_vm2, %v650_v54, %v644_v2  ;;  %v678_v11 = vsel %vm1233_vm6, 0.0, %v674_v1  ;;  %v681_v18 = vadd.f32 %v671_v10, %v661_v14  ;;  %v842_v54 = vld [vmem:[%s1405_s6] sm:$0xff] }
 0x242   : > { %v655_v7 = vsel %vm1222_vm4, 0.0, %v654_v6  ;;  %v660_v8 = vadd.f32 %v653_v5, %v600_v40  ;;  %v682_v19 = vadd.f32 %v678_v11, %v662_v13 }
 0x243   : > { %v659_v12 = vadd.f32 %v655_v7, %v582_v38  ;;  %v699_v38 = vld [vmem:[%s1404_s5 + $0x8] sm:$0xf] }
 0x244   : > { %v680_v16 = vadd.f32 %v676_v9, %v660_v8  ;;  %v709_v40 = vunpack.c.l.b16 %v699_v38 }
 0x245   : > { %v679_v17 = vadd.f32 %v673_v15, %v659_v12 }
 0x246   : > { %v711_v41 = vpack.c.b16 %v709_v40, %v709_v40 }
 0x247   : > { %v687_v20 = vpop.permute.xlu1 %686 }
 0x248   : > { %v689_v21 = vadd.f32 %v687_v20, %v679_v17  ;;  %v690_v22 = vadd.f32 %v687_v20, %v680_v16  ;;  %v691_v23 = vadd.f32 %v687_v20, %v681_v18  ;;  %v692_v24 = vadd.f32 %v687_v20, %v682_v19 }
 0x24a   : > { %v693_v25 = vmax.f32 %v689_v21, 0.0  ;;  %v694_v26 = vmax.f32 %v690_v22, 0.0  ;;  %v695_v27 = vmax.f32 %v691_v23, 0.0  ;;  %v696_v28 = vmax.f32 %v692_v24, 0.0 }
 0x24c   : > { %v700_v29 = vpack.c.bf16 %v693_v25, %v693_v25  ;;  %v701_v30 = vpack.c.bf16 %v694_v26, %v694_v26  ;;  %v702_v31 = vpack.c.bf16 %v695_v27, %v695_v27  ;;  %v703_v32 = vpack.c.bf16 %v696_v28, %v696_v28 }
 0x24e   : > { %v719_v33 = vsel %vm558_vm8, %v700_v29, 0  ;;  %v722_v34 = vsel %vm558_vm8, %v701_v30, 0  ;;  %v725_v35 = vsel %vm558_vm8, %v702_v31, 0  ;;  %v728_v36 = vsel %vm558_vm8, %v703_v32, 0 }
 0x24f   : > { %737 = vmatpush.bf16.msra.mxu0 %v719_v33  ;;  %755 = vmatpush.bf16.msra.mxu1 %v722_v34 }
 0x250   : > { %773 = vmatpush.bf16.msra.mxu2 %v725_v35  ;;  %791 = vmatpush.bf16.msra.mxu3 %v728_v36 }
 0x252   : > { %971 = vmatmul.msk.bf16.vlgmr.msra.gmra.mxu0 %vm551_vm9, %v986_v37  ;;  %973 = vmatmul.msk.bf16.vlgmr.msra.gmra.mxu1 %vm551_vm9, %v986_v37 }
 0x253   : > { %975 = vmatmul.msk.bf16.vlgmr.msra.gmra.mxu2 %vm551_vm9, %v986_v37  ;;  %977 = vmatmul.msk.bf16.vlgmr.msra.gmra.mxu3 %vm551_vm9, %v986_v37 }
 0x262   : > { %972 = vmatmul.msk.bf16.gmra.mxu0 %vm551_vm9, %v711_v41  ;;  %974 = vmatmul.msk.bf16.gmra.mxu1 %vm551_vm9, %v711_v41 }
 0x263   : > { %976 = vmatmul.msk.bf16.gmra.mxu2 %vm551_vm9, %v711_v41  ;;  %978 = vmatmul.msk.bf16.gmra.mxu3 %vm551_vm9, %v711_v41 }
 0x2cf   : > { %v739_v42 = vpop.f32.mrf.mxu0  ;;  %v757_v43 = vpop.f32.mrf.mxu1 }
 0x2d0   : > { %804 = vrot.lane.b32.xlu1 %v757_v43, %s1098_s22  ;;  %802 = vrot.lane.b32.xlu0 %v739_v42, %s1098_s22 }
 0x2d6   : > { %v775_v44 = vpop.f32.mrf.mxu2  ;;  %v793_v45 = vpop.f32.mrf.mxu3 }
 0x2d7   : > { %v741_v46 = vpop.f32.mrf.mxu0  ;;  %806 = vrot.lane.b32.xlu2 %v775_v44, %s1098_s22  ;;  %v759_v47 = vpop.f32.mrf.mxu1 }
 0x2d8   : > { %808 = vrot.lane.b32.xlu0 %v793_v45, %s1098_s22  ;;  %s270_s22 = sand.u32 1, %s1087_s25  }
 0x2d9   : > { %s861_s18 = scalar_lea.sflag [#allocation3], %s270_s22 }
 0x2de   : > { %v777_v49 = vpop.f32.mrf.mxu2  ;;  %v795_v50 = vpop.f32.mrf.mxu3 }
 0x2df   : > { %v744_v51 = vpop.f32.mrf.mxu0  ;;  %v762_v52 = vpop.f32.mrf.mxu1 }
 0x2e0   : > { %822 = vrot.lane.b32.xlu1 %v744_v51, %s1099_s23  ;;  %824 = vrot.lane.b32.xlu2 %v762_v52, %s1099_s23 }
 0x2e6   : > { %v780_v55 = vpop.f32.mrf.mxu2  ;;  %v798_v56 = vpop.f32.mrf.mxu3 }
 0x2e7   : > { %826 = vrot.lane.b32.xlu0 %v780_v55, %s1099_s23  ;;  %v746_v57 = vpop.f32.mrf.mxu0  ;;  %v764_v58 = vpop.f32.mrf.mxu1 }
 0x2e8   : > { %828 = vrot.lane.b32.xlu1 %v798_v56, %s1099_s23  ;;  %845 = vperm.xlu2 %1031, %v842_v54   ;;  %s940_s23 = sshll.u32 %s270_s22, 5 }
 0x2e9   : > { %s272_s13 = scalar_lea.vmem [#allocation2], %s940_s23 }
 0x2ea   : > { %s874_s16 = sshll.u32 %s272_s13, 4  ;;  %s875_s16 = int_to_ptr.vmem [resolvable:$true] %s874_s16 }
 0x2ee   : > { %v782_v60 = vpop.f32.mrf.mxu2  ;;  %v800_v62 = vpop.f32.mrf.mxu3 }
 0x331   : > { %v807_v63 = vpop.permute.xlu2 %806 }
 0x33a   : > { %v825_v1 = vpop.permute.xlu2 %824 }
 0x342   : > { %v803_v0 = vpop.permute.xlu0 %802  ;;  %v805_v2 = vpop.permute.xlu1 %804 }
 0x343   : > { %v846_v9 = vpop.permute.xlu2 %845  ;;  %v811_v10 = vsel %vm472_vm2, %v805_v2, %v807_v63  ;;  %v812_v53 = vsel %vm472_vm2, %v803_v0, %v805_v2 }
 0x344   : > { %v816_v13 = vsel %vm1216_vm3, 0.0, %v811_v10  ;;  %v819_v18 = vadd.f32 %v812_v53, %v759_v47 }
 0x345   : > { %v820_v17 = vadd.f32 %v816_v13, %v777_v49 }
 0x34a   : > { %v809_v3 = vpop.permute.xlu0 %808 }
 0x34b   : > { %v813_v4 = vsel %vm472_vm2, %v809_v3, %v803_v0  ;;  %v810_v14 = vsel %vm472_vm2, %v807_v63, %v809_v3 }
 0x34c   : > { %v814_v5 = vsel %vm1222_vm4, 0.0, %v813_v4  ;;  %v821_v21 = vadd.f32 %v810_v14, %v795_v50 }
 0x34d   : > { %v818_v6 = vadd.f32 %v814_v5, %v741_v46 }
 0x352   : > { %v823_v7 = vpop.permute.xlu1 %822 }
 0x353   : > { %v832_v8 = vsel %vm501_vm5, %v823_v7, %v825_v1 }
 0x354   : > { %v838_v11 = vadd.f32 %v832_v8, %v818_v6 }
 0x356   : > { %v848_v12 = vadd.f32 %v846_v9, %v838_v11 }
 0x358   : > { %v852_v15 = vmax.f32 %v848_v12, 0.0 }
 0x359   : > { %v827_v16 = vpop.permute.xlu0 %826 }
 0x35a   : > { %856 = vst [vmem:[%s272_s13] sm:$0xff] %v852_v15  ;;  %v831_v19 = vsel %vm501_vm5, %v825_v1, %v827_v16  ;;  %v829_v20 = vpop.permute.xlu1 %828 }
 0x35b   : > { %v835_v48 = vsel %vm1239_vm7, 0.0, %v831_v19  ;;  %v830_v22 = vsel %vm501_vm5, %v827_v16, %v829_v20  ;;  %v833_v23 = vsel %vm501_vm5, %v829_v20, %v823_v7 }
 0x35c   : > { %v839_v24 = vadd.f32 %v835_v48, %v819_v18  ;;  %v837_v25 = vsel %vm1233_vm6, 0.0, %v833_v23  ;;  %v840_v26 = vadd.f32 %v830_v22, %v820_v17 }
 0x35d   : > { %v841_v27 = vadd.f32 %v837_v25, %v821_v21 }
 0x35e   : > { %v849_v28 = vadd.f32 %v846_v9, %v839_v24  ;;  %v850_v61 = vadd.f32 %v846_v9, %v840_v26 }
 0x35f   : > { %v851_v29 = vadd.f32 %v846_v9, %v841_v27 }
 0x360   : > { %v853_v30 = vmax.f32 %v849_v28, 0.0  ;;  %v854_v39 = vmax.f32 %v850_v61, 0.0 }
 0x361   : > { %v855_v31 = vmax.f32 %v851_v29, 0.0 }
 0x362   : > { %857 = vst [vmem:[%s272_s13 + $0x8] sm:$0xff] %v853_v30 }
 0x363   : > { %858 = vst [vmem:[%s272_s13 + $0x10] sm:$0xff] %v854_v39 }
 0x364   : > { %859 = vst [vmem:[%s272_s13 + $0x18] sm:$0xff] %v855_v31 }
 0x365   : > { %1060 = shalt.err (!%p1057_p3)
}
 0x366   : > { %988 = dma.vmem_to_hbm [thread:$0]  (%p1178_p5), %s875_s16, 512, %s877_s17, %s861_s18  }
 0x367 PF: > { %p994_p4 = scmp.ge.s32.totalorder %s1095_s27, 2  ;;  %s888_s22 = sand.u32 1, %s1083_s24  }
 0x368   : > { %s889_s13 = scalar_lea.sflag [#allocation3], %s888_s22 }
 0x369   : > { %p991_p7 = pnand %p994_p4, %p1182_p6 }
 0x36b   : > { %p992_p8 = pneg %p991_p7 }
 0x36d   : > { %1078 = dma.done.wait (%p992_p8), %s889_s13, 512  }
 0x36e   : > { %1080 = vsyncadd (%p992_p8), %s889_s13, 4294966784  ;;  %p17_p9 = scmp.ge.s32.totalorder %s1165_s30, 4   ;;  %s1417_s24 = smov %s1087_s25 }
 0x36f   : > { %s1418_s25 = smov %s1091_s26  ;;  %s1419_s26 = smov %s1176_s10 }
 0x370   : > { %s1420_s27 = smov %s1165_s30  ;;  %19 = sbr.rel (!%p17_p9) target bundleno = 3 (0x3), region = 84 }
 0x375   :  { %895 = vsyncpa [#allocation3], 1 }
 0x376   :  { %897 = vsyncpa [#allocation3 + $0x1], 1 }

</bundles_post_ra>
